<compile_context>
chip_gen: v5e
topology: v5e:2x2
jax: 0.10.0
libtpu: 0.0.40
codegen_flags: <defaults>
</compile_context>

<pallas_src>
import functools

import jax
import jax.numpy as jnp
from jax.experimental import pallas as pl
from jax.experimental.pallas import tpu as pltpu


def _fused_concat_conv3x3_relu_kernel(
        hi_ref, lo_ref, w_ref, b_ref, o_ref, xbuf_ref, cols_ref,
        *, H, W, c_hi, c_lo, img_off, group):
    """One batch group: channel concat + 3x3 conv (stride 1, pad 1) + bias + ReLU.

    hi_ref  : (group, c_hi, H*W)        high features, NCHW with HW on lanes
    lo_ref  : (group, c_lo, H*W)        low features, same layout
    w_ref   : (Cout, 9*Cin)  bf16       GEMM-ready weights, columns (kh, kw, ci)
    b_ref   : (Cout, 1)      f32        bias
    o_ref   : (group, Cout, H*W)        output (NCHW-flat) -> lane-dense stores
    xbuf_ref: (group, Cin, L) f32 VMEM  zero-margined flat images (image@img_off)
    cols_ref: (9*Cin, group*H*W) f32    im2col slab (whole batch group on lanes)
    """
    c_in = c_hi + c_lo
    n_pix = H * W

    # Row-wrap edge masks (kw=0 / kw=2 taps wrap across image rows in the flat
    # layout); computed once per kernel invocation, reused for all taps/batches.
    col = jax.lax.broadcasted_iota(jnp.int32, (c_in, n_pix), 1) % W
    left_edge = col == 0
    right_edge = col == (W - 1)

    zeros_margin = jnp.zeros((c_in, W + 1), jnp.float32)

    # ---- fused channel concat + (shrunk) zero margins, per batch element ----
    for b in range(group):
        xbuf_ref[b, :, img_off - (W + 1):img_off] = zeros_margin
        xbuf_ref[b, :, img_off + n_pix:img_off + n_pix + (W + 1)] = zeros_margin
        xbuf_ref[b, 0:c_hi, img_off:img_off + n_pix] = hi_ref[b].astype(jnp.float32)
        xbuf_ref[b, c_hi:c_in, img_off:img_off + n_pix] = lo_ref[b].astype(jnp.float32)

    # ---- im2col slab: per kh load only the kw=1 slice, derive kw=0/2 by
    # lane roll (XLU) + edge mask; batch element b lands at lane offset b*n_pix.
    for b in range(group):
        for kh in range(3):
            start = img_off + (kh - 1) * W
            x_mid = xbuf_ref[b, :, start:start + n_pix]                  # kw = 1
            x_lft = jnp.where(left_edge, 0.0,
                              pltpu.roll(x_mid, 1, axis=1))              # kw = 0
            x_rgt = jnp.where(right_edge, 0.0,
                              pltpu.roll(x_mid, n_pix - 1, axis=1))      # kw = 2
            for kw, xt in ((0, x_lft), (1, x_mid), (2, x_rgt)):
                t = kh * 3 + kw
                cols_ref[t * c_in:(t + 1) * c_in,
                         b * n_pix:(b + 1) * n_pix] = xt

    # ---- single lane-dense bf16 GEMM on the MXU (f32 accumulate) + bias + ReLU
    # TODO(synk): for real UNet channel counts (Cin >= 128) drop the materialized
    # slab and accumulate 9 per-tap matmuls into a (Cout, tile) f32 accumulator
    # instead (the slab is the dominant VMEM consumer on v7x's 64 MiB).
    acc = jnp.dot(w_ref[...], cols_ref[...].astype(jnp.bfloat16),
                  preferred_element_type=jnp.float32)
    acc = jnp.maximum(acc + b_ref[...], 0.0)

    # Per-batch lane-dense stores (each 256 lanes wide, multiple of 128).
    for b in range(group):
        o_ref[b] = acc[:, b * n_pix:(b + 1) * n_pix].astype(o_ref.dtype)


def unet_up3_forward(high_feature_nchw, low_feature_nchw, w_oihw, bias,
                     *, num_batch_groups=1):
    """Exact semantics of unetUp3.forward (n_concat=2): concat on channels,
    then Conv2d(3x3, stride=1, pad=1) + ReLU. I/O in NCHW like PyTorch.

    num_batch_groups: number of grid steps ("parallel" axis).  Default 1 folds
    the whole batch into one GEMM (best on v5e/v6e's single TensorCore); set 2
    on v7x so both TensorCores get a batch group.
    """
    B, c_hi, H, W = high_feature_nchw.shape
    c_lo = low_feature_nchw.shape[1]
    c_in = c_hi + c_lo
    c_out = w_oihw.shape[0]
    n_pix = H * W

    num_batch_groups = min(num_batch_groups, B)
    assert B % num_batch_groups == 0
    group = B // num_batch_groups

    # Free (contiguous, metadata-only) views: NCHW with HW on the lane axis.
    hi = high_feature_nchw.reshape(B, c_hi, n_pix)
    lo = low_feature_nchw.reshape(B, c_lo, n_pix)
    # (Cout, Cin, 3, 3) -> (Cout, 3, 3, Cin) -> (Cout, 9*Cin), bf16 for the MXU.
    w2d = jnp.transpose(w_oihw, (0, 2, 3, 1)).reshape(c_out, 9 * c_in)
    w2d = w2d.astype(jnp.bfloat16)
    b2d = bias.reshape(c_out, 1).astype(jnp.float32)

    # Image placed at a 128-aligned lane offset with >= W+1 zero margin on both
    # sides, so every tap read is a simple in-bounds static slice.
    img_off = ((W + 1 + 127) // 128) * 128
    buf_len = img_off + n_pix + W + 1

    kernel = functools.partial(
        _fused_concat_conv3x3_relu_kernel,
        H=H, W=W, c_hi=c_hi, c_lo=c_lo, img_off=img_off, group=group)

    # TODO(synk): for production UNet shapes add an H-tiled grid axis with a
    # 1-row halo (keeps stores lane-dense, bounds VMEM, feeds the pipeline) and
    # set vmem_limit_bytes explicitly per generation (16/32/32 MiB default
    # scoped on v5e/v6e/v7x); unnecessary at this toy size.
    y = pl.pallas_call(
        kernel,
        out_shape=jax.ShapeDtypeStruct((B, c_out, n_pix),
                                       high_feature_nchw.dtype),
        grid_spec=pltpu.PrefetchScalarGridSpec(
            num_scalar_prefetch=0,
            grid=(num_batch_groups,),
            in_specs=[
                pl.BlockSpec((group, c_hi, n_pix), lambda g: (g, 0, 0)),
                pl.BlockSpec((group, c_lo, n_pix), lambda g: (g, 0, 0)),
                pl.BlockSpec((c_out, 9 * c_in), lambda g: (0, 0)),
                pl.BlockSpec((c_out, 1), lambda g: (0, 0)),
            ],
            out_specs=pl.BlockSpec((group, c_out, n_pix), lambda g: (g, 0, 0)),
            scratch_shapes=[
                pltpu.VMEM((group, c_in, buf_len), jnp.float32),
                pltpu.VMEM((9 * c_in, group * n_pix), jnp.float32),
            ],
        ),
        compiler_params=pltpu.CompilerParams(
            dimension_semantics=("parallel",)),
    )(hi, lo, w2d, b2d)

    return y.reshape(B, c_out, H, W)   # free: output is already NCHW-flat


if __name__ == "__main__":
    # Module config: unetUp3(in_size=4, out_size=8, n_concat=2)
    #   -> conv input channels = in_size * 2 = 8
    B, in_size, out_size, Hs, Ws = 2, 4, 8, 16, 16
    c_in = in_size * 2

    key = jax.random.PRNGKey(0)
    k_hi, k_lo, k_w, k_b = jax.random.split(key, 4)

    high = jax.random.normal(k_hi, (B, in_size, Hs, Ws), dtype=jnp.float32)
    low = jax.random.normal(k_lo, (B, in_size, Hs, Ws), dtype=jnp.float32)

    # Deterministic synthetic parameters (Conv2d(c_in, out_size, 3, 1, 1)).
    fan_in = c_in * 3 * 3
    bound = 1.0 / (fan_in ** 0.5)
    w_oihw = jax.random.uniform(
        k_w, (out_size, c_in, 3, 3), minval=-bound, maxval=bound,
        dtype=jnp.float32)
    bias = jax.random.uniform(
        k_b, (out_size,), minval=-bound, maxval=bound, dtype=jnp.float32)

    out = unet_up3_forward(high, low, w_oihw, bias)
    out = jax.block_until_ready(out)
    assert out.shape == (B, out_size, Hs, Ws), out.shape

    # Cross-check against XLA's conv (pure JAX reference, no PyTorch).  The
    # kernel's GEMM operands are bf16 (f32 accumulate), so compare against a
    # reference with bf16-rounded operands; tolerance covers accumulation order.
    x_nchw = jnp.concatenate([high, low], axis=1)
    x_bf = x_nchw.astype(jnp.bfloat16).astype(jnp.float32)
    w_bf = w_oihw.astype(jnp.bfloat16).astype(jnp.float32)
    ref = jax.lax.conv_general_dilated(
        x_bf, w_bf, window_strides=(1, 1), padding=((1, 1), (1, 1)),
        dimension_numbers=("NCHW", "OIHW", "NCHW"))
    ref = jnp.maximum(ref + bias.reshape(1, out_size, 1, 1), 0.0)
    assert jnp.allclose(out, ref, atol=1e-2, rtol=1e-2), (
        float(jnp.max(jnp.abs(out - ref))))

    print("KERNEL_OK")
</pallas_src>

<mosaic_0001>
module attributes {stable_mosaic.version = 11 : i64} {
  func.func @_fused_concat_conv3x3_relu_kernel(%arg0: i32, %arg1: memref<2x4x256xf32, #tpu.memory_space<vmem>>, %arg2: memref<2x4x256xf32, #tpu.memory_space<vmem>>, %arg3: memref<8x72xbf16, #tpu.memory_space<vmem>>, %arg4: memref<8x1xf32, #tpu.memory_space<vmem>>, %arg5: memref<2x8x256xf32, #tpu.memory_space<vmem>>, %arg6: memref<2x8x401xf32, #tpu.memory_space<vmem>>, %arg7: memref<72x512xf32, #tpu.memory_space<vmem>>) attributes {dimension_semantics = [#tpu.dimension_semantics<parallel>], iteration_bounds = array<i64: 1>, scalar_prefetch = 0 : i64, scratch_operands = 2 : i64, tpu.core_type = #tpu.core_type<tc>, window_params = [{transform_indices = @transform_0, window_bounds = array<i64: 2, 4, 256>}, {transform_indices = @transform_1, window_bounds = array<i64: 2, 4, 256>}, {pipeline_mode = #tpu.pipeline_mode<synchronous>, transform_indices = @transform_2, window_bounds = array<i64: 8, 72>}, {pipeline_mode = #tpu.pipeline_mode<synchronous>, transform_indices = @transform_3, window_bounds = array<i64: 8, 1>}, {transform_indices = @transform_4, window_bounds = array<i64: 2, 8, 256>}]} {
    %0 = tpu.iota {dimensions = array<i32: 1>} : vector<8x256xi32>
    %c16_i32 = arith.constant 16 : i32
    %c0_i32 = arith.constant 0 : i32
    %1 = arith.cmpi eq, %c16_i32, %c0_i32 : i32
    %c1_i32 = arith.constant 1 : i32
    %2 = arith.select %1, %c1_i32, %c16_i32 : i32
    %3 = vector.broadcast %2 : i32 to vector<8x256xi32>
    %4 = arith.remsi %0, %3 : vector<8x256xi32>
    %c0_i32_0 = arith.constant 0 : i32
    %5 = vector.broadcast %c0_i32_0 : i32 to vector<8x256xi32>
    %6 = arith.cmpi ne, %4, %5 : vector<8x256xi32>
    %c0_i32_1 = arith.constant 0 : i32
    %7 = vector.broadcast %c0_i32_1 : i32 to vector<8x256xi32>
    %8 = arith.cmpi slt, %4, %7 : vector<8x256xi32>
    %c0_i32_2 = arith.constant 0 : i32
    %9 = arith.cmpi slt, %2, %c0_i32_2 : i32
    %10 = vector.broadcast %9 : i1 to vector<8x256xi1>
    %11 = vector.broadcast %10 : vector<8x256xi1> to vector<8x256xi1>
    %12 = arith.xori %8, %11 : vector<8x256xi1>
    %13 = arith.andi %12, %6 : vector<8x256xi1>
    %14 = vector.broadcast %2 : i32 to vector<8x256xi32>
    %15 = arith.addi %4, %14 : vector<8x256xi32>
    %16 = arith.select %13, %15, %4 : vector<8x256xi1>, vector<8x256xi32>
    %c0_i32_3 = arith.constant 0 : i32
    %17 = vector.broadcast %c0_i32_3 : i32 to vector<8x256xi32>
    %18 = arith.cmpi eq, %16, %17 : vector<8x256xi32>
    %c15_i32 = arith.constant 15 : i32
    %19 = vector.broadcast %c15_i32 : i32 to vector<8x256xi32>
    %20 = arith.cmpi eq, %16, %19 : vector<8x256xi32>
    %cst = arith.constant 0.000000e+00 : f32
    %21 = vector.broadcast %cst : f32 to vector<8x17xf32>
    %c0 = arith.constant 0 : index
    %c0_4 = arith.constant 0 : index
    %c111 = arith.constant 111 : index
    %22 = vector.load %arg6[%c0, %c0_4, %c111] : memref<2x8x401xf32, #tpu.memory_space<vmem>>, vector<1x8x17xf32>
    %23 = vector.shape_cast %22 : vector<1x8x17xf32> to vector<8x17xf32>
    %24 = vector.shape_cast %21 : vector<8x17xf32> to vector<1x8x17xf32>
    tpu.vector_store %arg6[%c0, %c0_4, %c111], %24 {strides = array<i32>} : memref<2x8x401xf32, #tpu.memory_space<vmem>>, vector<1x8x17xf32>,
    %c0_5 = arith.constant 0 : index
    %c0_6 = arith.constant 0 : index
    %c384 = arith.constant 384 : index
    %25 = vector.load %arg6[%c0_5, %c0_6, %c384] : memref<2x8x401xf32, #tpu.memory_space<vmem>>, vector<1x8x17xf32>
    %26 = vector.shape_cast %25 : vector<1x8x17xf32> to vector<8x17xf32>
    %27 = vector.shape_cast %21 : vector<8x17xf32> to vector<1x8x17xf32>
    tpu.vector_store %arg6[%c0_5, %c0_6, %c384], %27 {strides = array<i32>} : memref<2x8x401xf32, #tpu.memory_space<vmem>>, vector<1x8x17xf32>,
    %c0_7 = arith.constant 0 : index
    %c0_8 = arith.constant 0 : index
    %c0_9 = arith.constant 0 : index
    %28 = vector.load %arg1[%c0_7, %c0_8, %c0_9] : memref<2x4x256xf32, #tpu.memory_space<vmem>>, vector<1x4x256xf32>
    %29 = vector.shape_cast %28 : vector<1x4x256xf32> to vector<4x256xf32>
    %c0_10 = arith.constant 0 : index
    %c0_11 = arith.constant 0 : index
    %c128 = arith.constant 128 : index
    %30 = vector.load %arg6[%c0_10, %c0_11, %c128] : memref<2x8x401xf32, #tpu.memory_space<vmem>>, vector<1x4x256xf32>
    %31 = vector.shape_cast %30 : vector<1x4x256xf32> to vector<4x256xf32>
    %32 = vector.shape_cast %29 : vector<4x256xf32> to vector<1x4x256xf32>
    tpu.vector_store %arg6[%c0_10, %c0_11, %c128], %32 {strides = array<i32>} : memref<2x8x401xf32, #tpu.memory_space<vmem>>, vector<1x4x256xf32>,
    %c0_12 = arith.constant 0 : index
    %c0_13 = arith.constant 0 : index
    %c0_14 = arith.constant 0 : index
    %33 = vector.load %arg2[%c0_12, %c0_13, %c0_14] : memref<2x4x256xf32, #tpu.memory_space<vmem>>, vector<1x4x256xf32>
    %34 = vector.shape_cast %33 : vector<1x4x256xf32> to vector<4x256xf32>
    %c0_15 = arith.constant 0 : index
    %c4 = arith.constant 4 : index
    %c128_16 = arith.constant 128 : index
    %35 = vector.load %arg6[%c0_15, %c4, %c128_16] : memref<2x8x401xf32, #tpu.memory_space<vmem>>, vector<1x4x256xf32>
    %36 = vector.shape_cast %35 : vector<1x4x256xf32> to vector<4x256xf32>
    %37 = vector.shape_cast %34 : vector<4x256xf32> to vector<1x4x256xf32>
    tpu.vector_store %arg6[%c0_15, %c4, %c128_16], %37 {strides = array<i32>} : memref<2x8x401xf32, #tpu.memory_space<vmem>>, vector<1x4x256xf32>,
    %c1 = arith.constant 1 : index
    %c0_17 = arith.constant 0 : index
    %c111_18 = arith.constant 111 : index
    %38 = vector.load %arg6[%c1, %c0_17, %c111_18] : memref<2x8x401xf32, #tpu.memory_space<vmem>>, vector<1x8x17xf32>
    %39 = vector.shape_cast %38 : vector<1x8x17xf32> to vector<8x17xf32>
    %40 = vector.shape_cast %21 : vector<8x17xf32> to vector<1x8x17xf32>
    tpu.vector_store %arg6[%c1, %c0_17, %c111_18], %40 {strides = array<i32>} : memref<2x8x401xf32, #tpu.memory_space<vmem>>, vector<1x8x17xf32>,
    %c1_19 = arith.constant 1 : index
    %c0_20 = arith.constant 0 : index
    %c384_21 = arith.constant 384 : index
    %41 = vector.load %arg6[%c1_19, %c0_20, %c384_21] : memref<2x8x401xf32, #tpu.memory_space<vmem>>, vector<1x8x17xf32>
    %42 = vector.shape_cast %41 : vector<1x8x17xf32> to vector<8x17xf32>
    %43 = vector.shape_cast %21 : vector<8x17xf32> to vector<1x8x17xf32>
    tpu.vector_store %arg6[%c1_19, %c0_20, %c384_21], %43 {strides = array<i32>} : memref<2x8x401xf32, #tpu.memory_space<vmem>>, vector<1x8x17xf32>,
    %c1_22 = arith.constant 1 : index
    %c0_23 = arith.constant 0 : index
    %c0_24 = arith.constant 0 : index
    %44 = vector.load %arg1[%c1_22, %c0_23, %c0_24] : memref<2x4x256xf32, #tpu.memory_space<vmem>>, vector<1x4x256xf32>
    %45 = vector.shape_cast %44 : vector<1x4x256xf32> to vector<4x256xf32>
    %c1_25 = arith.constant 1 : index
    %c0_26 = arith.constant 0 : index
    %c128_27 = arith.constant 128 : index
    %46 = vector.load %arg6[%c1_25, %c0_26, %c128_27] : memref<2x8x401xf32, #tpu.memory_space<vmem>>, vector<1x4x256xf32>
    %47 = vector.shape_cast %46 : vector<1x4x256xf32> to vector<4x256xf32>
    %48 = vector.shape_cast %45 : vector<4x256xf32> to vector<1x4x256xf32>
    tpu.vector_store %arg6[%c1_25, %c0_26, %c128_27], %48 {strides = array<i32>} : memref<2x8x401xf32, #tpu.memory_space<vmem>>, vector<1x4x256xf32>,
    %c1_28 = arith.constant 1 : index
    %c0_29 = arith.constant 0 : index
    %c0_30 = arith.constant 0 : index
    %49 = vector.load %arg2[%c1_28, %c0_29, %c0_30] : memref<2x4x256xf32, #tpu.memory_space<vmem>>, vector<1x4x256xf32>
    %50 = vector.shape_cast %49 : vector<1x4x256xf32> to vector<4x256xf32>
    %c1_31 = arith.constant 1 : index
    %c4_32 = arith.constant 4 : index
    %c128_33 = arith.constant 128 : index
    %51 = vector.load %arg6[%c1_31, %c4_32, %c128_33] : memref<2x8x401xf32, #tpu.memory_space<vmem>>, vector<1x4x256xf32>
    %52 = vector.shape_cast %51 : vector<1x4x256xf32> to vector<4x256xf32>
    %53 = vector.shape_cast %50 : vector<4x256xf32> to vector<1x4x256xf32>
    tpu.vector_store %arg6[%c1_31, %c4_32, %c128_33], %53 {strides = array<i32>} : memref<2x8x401xf32, #tpu.memory_space<vmem>>, vector<1x4x256xf32>,
    %c0_34 = arith.constant 0 : index
    %c0_35 = arith.constant 0 : index
    %c112 = arith.constant 112 : index
    %54 = vector.load %arg6[%c0_34, %c0_35, %c112] : memref<2x8x401xf32, #tpu.memory_space<vmem>>, vector<1x8x256xf32>
    %55 = vector.shape_cast %54 : vector<1x8x256xf32> to vector<8x256xf32>
    %c1_i32_36 = arith.constant 1 : i32
    %56 = tpu.dynamic_rotate %55 by %c1_i32_36 dim 1 : vector<8x256xf32>, i32 -> vector<8x256xf32>
    %cst_37 = arith.constant 0.000000e+00 : f32
    %57 = vector.broadcast %cst_37 : f32 to vector<8x256xf32>
    %58 = arith.select %18, %57, %56 : vector<8x256xi1>, vector<8x256xf32>
    %c255_i32 = arith.constant 255 : i32
    %59 = tpu.dynamic_rotate %55 by %c255_i32 dim 1 : vector<8x256xf32>, i32 -> vector<8x256xf32>
    %cst_38 = arith.constant 0.000000e+00 : f32
    %60 = vector.broadcast %cst_38 : f32 to vector<8x256xf32>
    %61 = arith.select %20, %60, %59 : vector<8x256xi1>, vector<8x256xf32>
    %c0_39 = arith.constant 0 : index
    %c0_40 = arith.constant 0 : index
    %62 = vector.load %arg7[%c0_39, %c0_40] : memref<72x512xf32, #tpu.memory_space<vmem>>, vector<8x256xf32>
    tpu.vector_store %arg7[%c0_39, %c0_40], %58 {strides = array<i32>} : memref<72x512xf32, #tpu.memory_space<vmem>>, vector<8x256xf32>,
    %c8 = arith.constant 8 : index
    %c0_41 = arith.constant 0 : index
    %63 = vector.load %arg7[%c8, %c0_41] : memref<72x512xf32, #tpu.memory_space<vmem>>, vector<8x256xf32>
    tpu.vector_store %arg7[%c8, %c0_41], %55 {strides = array<i32>} : memref<72x512xf32, #tpu.memory_space<vmem>>, vector<8x256xf32>,
    %c16 = arith.constant 16 : index
    %c0_42 = arith.constant 0 : index
    %64 = vector.load %arg7[%c16, %c0_42] : memref<72x512xf32, #tpu.memory_space<vmem>>, vector<8x256xf32>
    tpu.vector_store %arg7[%c16, %c0_42], %61 {strides = array<i32>} : memref<72x512xf32, #tpu.memory_space<vmem>>, vector<8x256xf32>,
    %c0_43 = arith.constant 0 : index
    %c0_44 = arith.constant 0 : index
    %c128_45 = arith.constant 128 : index
    %65 = vector.load %arg6[%c0_43, %c0_44, %c128_45] : memref<2x8x401xf32, #tpu.memory_space<vmem>>, vector<1x8x256xf32>
    %66 = vector.shape_cast %65 : vector<1x8x256xf32> to vector<8x256xf32>
    %c1_i32_46 = arith.constant 1 : i32
    %67 = tpu.dynamic_rotate %66 by %c1_i32_46 dim 1 : vector<8x256xf32>, i32 -> vector<8x256xf32>
    %cst_47 = arith.constant 0.000000e+00 : f32
    %68 = vector.broadcast %cst_47 : f32 to vector<8x256xf32>
    %69 = arith.select %18, %68, %67 : vector<8x256xi1>, vector<8x256xf32>
    %c255_i32_48 = arith.constant 255 : i32
    %70 = tpu.dynamic_rotate %66 by %c255_i32_48 dim 1 : vector<8x256xf32>, i32 -> vector<8x256xf32>
    %cst_49 = arith.constant 0.000000e+00 : f32
    %71 = vector.broadcast %cst_49 : f32 to vector<8x256xf32>
    %72 = arith.select %20, %71, %70 : vector<8x256xi1>, vector<8x256xf32>
    %c24 = arith.constant 24 : index
    %c0_50 = arith.constant 0 : index
    %73 = vector.load %arg7[%c24, %c0_50] : memref<72x512xf32, #tpu.memory_space<vmem>>, vector<8x256xf32>
    tpu.vector_store %arg7[%c24, %c0_50], %69 {strides = array<i32>} : memref<72x512xf32, #tpu.memory_space<vmem>>, vector<8x256xf32>,
    %c32 = arith.constant 32 : index
    %c0_51 = arith.constant 0 : index
    %74 = vector.load %arg7[%c32, %c0_51] : memref<72x512xf32, #tpu.memory_space<vmem>>, vector<8x256xf32>
    tpu.vector_store %arg7[%c32, %c0_51], %66 {strides = array<i32>} : memref<72x512xf32, #tpu.memory_space<vmem>>, vector<8x256xf32>,
    %c40 = arith.constant 40 : index
    %c0_52 = arith.constant 0 : index
    %75 = vector.load %arg7[%c40, %c0_52] : memref<72x512xf32, #tpu.memory_space<vmem>>, vector<8x256xf32>
    tpu.vector_store %arg7[%c40, %c0_52], %72 {strides = array<i32>} : memref<72x512xf32, #tpu.memory_space<vmem>>, vector<8x256xf32>,
    %c0_53 = arith.constant 0 : index
    %c0_54 = arith.constant 0 : index
    %c144 = arith.constant 144 : index
    %76 = vector.load %arg6[%c0_53, %c0_54, %c144] : memref<2x8x401xf32, #tpu.memory_space<vmem>>, vector<1x8x256xf32>
    %77 = vector.shape_cast %76 : vector<1x8x256xf32> to vector<8x256xf32>
    %c1_i32_55 = arith.constant 1 : i32
    %78 = tpu.dynamic_rotate %77 by %c1_i32_55 dim 1 : vector<8x256xf32>, i32 -> vector<8x256xf32>
    %cst_56 = arith.constant 0.000000e+00 : f32
    %79 = vector.broadcast %cst_56 : f32 to vector<8x256xf32>
    %80 = arith.select %18, %79, %78 : vector<8x256xi1>, vector<8x256xf32>
    %c255_i32_57 = arith.constant 255 : i32
    %81 = tpu.dynamic_rotate %77 by %c255_i32_57 dim 1 : vector<8x256xf32>, i32 -> vector<8x256xf32>
    %cst_58 = arith.constant 0.000000e+00 : f32
    %82 = vector.broadcast %cst_58 : f32 to vector<8x256xf32>
    %83 = arith.select %20, %82, %81 : vector<8x256xi1>, vector<8x256xf32>
    %c48 = arith.constant 48 : index
    %c0_59 = arith.constant 0 : index
    %84 = vector.load %arg7[%c48, %c0_59] : memref<72x512xf32, #tpu.memory_space<vmem>>, vector<8x256xf32>
    tpu.vector_store %arg7[%c48, %c0_59], %80 {strides = array<i32>} : memref<72x512xf32, #tpu.memory_space<vmem>>, vector<8x256xf32>,
    %c56 = arith.constant 56 : index
    %c0_60 = arith.constant 0 : index
    %85 = vector.load %arg7[%c56, %c0_60] : memref<72x512xf32, #tpu.memory_space<vmem>>, vector<8x256xf32>
    tpu.vector_store %arg7[%c56, %c0_60], %77 {strides = array<i32>} : memref<72x512xf32, #tpu.memory_space<vmem>>, vector<8x256xf32>,
    %c64 = arith.constant 64 : index
    %c0_61 = arith.constant 0 : index
    %86 = vector.load %arg7[%c64, %c0_61] : memref<72x512xf32, #tpu.memory_space<vmem>>, vector<8x256xf32>
    tpu.vector_store %arg7[%c64, %c0_61], %83 {strides = array<i32>} : memref<72x512xf32, #tpu.memory_space<vmem>>, vector<8x256xf32>,
    %c1_62 = arith.constant 1 : index
    %c0_63 = arith.constant 0 : index
    %c112_64 = arith.constant 112 : index
    %87 = vector.load %arg6[%c1_62, %c0_63, %c112_64] : memref<2x8x401xf32, #tpu.memory_space<vmem>>, vector<1x8x256xf32>
    %88 = vector.shape_cast %87 : vector<1x8x256xf32> to vector<8x256xf32>
    %c1_i32_65 = arith.constant 1 : i32
    %89 = tpu.dynamic_rotate %88 by %c1_i32_65 dim 1 : vector<8x256xf32>, i32 -> vector<8x256xf32>
    %cst_66 = arith.constant 0.000000e+00 : f32
    %90 = vector.broadcast %cst_66 : f32 to vector<8x256xf32>
    %91 = arith.select %18, %90, %89 : vector<8x256xi1>, vector<8x256xf32>
    %c255_i32_67 = arith.constant 255 : i32
    %92 = tpu.dynamic_rotate %88 by %c255_i32_67 dim 1 : vector<8x256xf32>, i32 -> vector<8x256xf32>
    %cst_68 = arith.constant 0.000000e+00 : f32
    %93 = vector.broadcast %cst_68 : f32 to vector<8x256xf32>
    %94 = arith.select %20, %93, %92 : vector<8x256xi1>, vector<8x256xf32>
    %c0_69 = arith.constant 0 : index
    %c256 = arith.constant 256 : index
    %95 = vector.load %arg7[%c0_69, %c256] : memref<72x512xf32, #tpu.memory_space<vmem>>, vector<8x256xf32>
    tpu.vector_store %arg7[%c0_69, %c256], %91 {strides = array<i32>} : memref<72x512xf32, #tpu.memory_space<vmem>>, vector<8x256xf32>,
    %c8_70 = arith.constant 8 : index
    %c256_71 = arith.constant 256 : index
    %96 = vector.load %arg7[%c8_70, %c256_71] : memref<72x512xf32, #tpu.memory_space<vmem>>, vector<8x256xf32>
    tpu.vector_store %arg7[%c8_70, %c256_71], %88 {strides = array<i32>} : memref<72x512xf32, #tpu.memory_space<vmem>>, vector<8x256xf32>,
    %c16_72 = arith.constant 16 : index
    %c256_73 = arith.constant 256 : index
    %97 = vector.load %arg7[%c16_72, %c256_73] : memref<72x512xf32, #tpu.memory_space<vmem>>, vector<8x256xf32>
    tpu.vector_store %arg7[%c16_72, %c256_73], %94 {strides = array<i32>} : memref<72x512xf32, #tpu.memory_space<vmem>>, vector<8x256xf32>,
    %c1_74 = arith.constant 1 : index
    %c0_75 = arith.constant 0 : index
    %c128_76 = arith.constant 128 : index
    %98 = vector.load %arg6[%c1_74, %c0_75, %c128_76] : memref<2x8x401xf32, #tpu.memory_space<vmem>>, vector<1x8x256xf32>
    %99 = vector.shape_cast %98 : vector<1x8x256xf32> to vector<8x256xf32>
    %c1_i32_77 = arith.constant 1 : i32
    %100 = tpu.dynamic_rotate %99 by %c1_i32_77 dim 1 : vector<8x256xf32>, i32 -> vector<8x256xf32>
    %cst_78 = arith.constant 0.000000e+00 : f32
    %101 = vector.broadcast %cst_78 : f32 to vector<8x256xf32>
    %102 = arith.select %18, %101, %100 : vector<8x256xi1>, vector<8x256xf32>
    %c255_i32_79 = arith.constant 255 : i32
    %103 = tpu.dynamic_rotate %99 by %c255_i32_79 dim 1 : vector<8x256xf32>, i32 -> vector<8x256xf32>
    %cst_80 = arith.constant 0.000000e+00 : f32
    %104 = vector.broadcast %cst_80 : f32 to vector<8x256xf32>
    %105 = arith.select %20, %104, %103 : vector<8x256xi1>, vector<8x256xf32>
    %c24_81 = arith.constant 24 : index
    %c256_82 = arith.constant 256 : index
    %106 = vector.load %arg7[%c24_81, %c256_82] : memref<72x512xf32, #tpu.memory_space<vmem>>, vector<8x256xf32>
    tpu.vector_store %arg7[%c24_81, %c256_82], %102 {strides = array<i32>} : memref<72x512xf32, #tpu.memory_space<vmem>>, vector<8x256xf32>,
    %c32_83 = arith.constant 32 : index
    %c256_84 = arith.constant 256 : index
    %107 = vector.load %arg7[%c32_83, %c256_84] : memref<72x512xf32, #tpu.memory_space<vmem>>, vector<8x256xf32>
    tpu.vector_store %arg7[%c32_83, %c256_84], %99 {strides = array<i32>} : memref<72x512xf32, #tpu.memory_space<vmem>>, vector<8x256xf32>,
    %c40_85 = arith.constant 40 : index
    %c256_86 = arith.constant 256 : index
    %108 = vector.load %arg7[%c40_85, %c256_86] : memref<72x512xf32, #tpu.memory_space<vmem>>, vector<8x256xf32>
    tpu.vector_store %arg7[%c40_85, %c256_86], %105 {strides = array<i32>} : memref<72x512xf32, #tpu.memory_space<vmem>>, vector<8x256xf32>,
    %c1_87 = arith.constant 1 : index
    %c0_88 = arith.constant 0 : index
    %c144_89 = arith.constant 144 : index
    %109 = vector.load %arg6[%c1_87, %c0_88, %c144_89] : memref<2x8x401xf32, #tpu.memory_space<vmem>>, vector<1x8x256xf32>
    %110 = vector.shape_cast %109 : vector<1x8x256xf32> to vector<8x256xf32>
    %c1_i32_90 = arith.constant 1 : i32
    %111 = tpu.dynamic_rotate %110 by %c1_i32_90 dim 1 : vector<8x256xf32>, i32 -> vector<8x256xf32>
    %cst_91 = arith.constant 0.000000e+00 : f32
    %112 = vector.broadcast %cst_91 : f32 to vector<8x256xf32>
    %113 = arith.select %18, %112, %111 : vector<8x256xi1>, vector<8x256xf32>
    %c255_i32_92 = arith.constant 255 : i32
    %114 = tpu.dynamic_rotate %110 by %c255_i32_92 dim 1 : vector<8x256xf32>, i32 -> vector<8x256xf32>
    %cst_93 = arith.constant 0.000000e+00 : f32
    %115 = vector.broadcast %cst_93 : f32 to vector<8x256xf32>
    %116 = arith.select %20, %115, %114 : vector<8x256xi1>, vector<8x256xf32>
    %c48_94 = arith.constant 48 : index
    %c256_95 = arith.constant 256 : index
    %117 = vector.load %arg7[%c48_94, %c256_95] : memref<72x512xf32, #tpu.memory_space<vmem>>, vector<8x256xf32>
    tpu.vector_store %arg7[%c48_94, %c256_95], %113 {strides = array<i32>} : memref<72x512xf32, #tpu.memory_space<vmem>>, vector<8x256xf32>,
    %c56_96 = arith.constant 56 : index
    %c256_97 = arith.constant 256 : index
    %118 = vector.load %arg7[%c56_96, %c256_97] : memref<72x512xf32, #tpu.memory_space<vmem>>, vector<8x256xf32>
    tpu.vector_store %arg7[%c56_96, %c256_97], %110 {strides = array<i32>} : memref<72x512xf32, #tpu.memory_space<vmem>>, vector<8x256xf32>,
    %c64_98 = arith.constant 64 : index
    %c256_99 = arith.constant 256 : index
    %119 = vector.load %arg7[%c64_98, %c256_99] : memref<72x512xf32, #tpu.memory_space<vmem>>, vector<8x256xf32>
    tpu.vector_store %arg7[%c64_98, %c256_99], %116 {strides = array<i32>} : memref<72x512xf32, #tpu.memory_space<vmem>>, vector<8x256xf32>,
    %c0_100 = arith.constant 0 : index
    %c0_101 = arith.constant 0 : index
    %120 = vector.load %arg3[%c0_100, %c0_101] : memref<8x72xbf16, #tpu.memory_space<vmem>>, vector<8x72xbf16>
    %c0_102 = arith.constant 0 : index
    %c0_103 = arith.constant 0 : index
    %121 = vector.load %arg7[%c0_102, %c0_103] : memref<72x512xf32, #tpu.memory_space<vmem>>, vector<72x512xf32>
    %122 = arith.truncf %121 : vector<72x512xf32> to vector<72x512xbf16>
    %cst_104 = arith.constant dense<0.000000e+00> : vector<8x512xf32>
    %123 = tpu.matmul %120, %122, %cst_104 {dimension_numbers = #tpu.dot_dimension_numbers<[1], [0], [0], [1], [0, 0, 1, 1], [], []>} : vector<8x72xbf16>, vector<72x512xbf16>, vector<8x512xf32> -> vector<8x512xf32>
    %c0_105 = arith.constant 0 : index
    %c0_106 = arith.constant 0 : index
    %124 = vector.load %arg4[%c0_105, %c0_106] : memref<8x1xf32, #tpu.memory_space<vmem>>, vector<8x1xf32>
    %125 = vector.broadcast %124 : vector<8x1xf32> to vector<8x512xf32>
    %126 = arith.addf %123, %125 : vector<8x512xf32>
    %cst_107 = arith.constant 0.000000e+00 : f32
    %127 = vector.broadcast %cst_107 : f32 to vector<8x512xf32>
    %128 = arith.maximumf %126, %127 : vector<8x512xf32>
    %129 = vector.extract_strided_slice %128 {offsets = [0, 0], sizes = [8, 256], strides = [1, 1]} : vector<8x512xf32> to vector<8x256xf32>
    %c0_108 = arith.constant 0 : index
    %c0_109 = arith.constant 0 : index
    %c0_110 = arith.constant 0 : index
    %130 = vector.load %arg5[%c0_108, %c0_109, %c0_110] : memref<2x8x256xf32, #tpu.memory_space<vmem>>, vector<1x8x256xf32>
    %131 = vector.shape_cast %130 : vector<1x8x256xf32> to vector<8x256xf32>
    %132 = vector.shape_cast %129 : vector<8x256xf32> to vector<1x8x256xf32>
    tpu.vector_store %arg5[%c0_108, %c0_109, %c0_110], %132 {strides = array<i32>} : memref<2x8x256xf32, #tpu.memory_space<vmem>>, vector<1x8x256xf32>,
    %133 = vector.extract_strided_slice %128 {offsets = [0, 256], sizes = [8, 256], strides = [1, 1]} : vector<8x512xf32> to vector<8x256xf32>
    %c1_111 = arith.constant 1 : index
    %c0_112 = arith.constant 0 : index
    %c0_113 = arith.constant 0 : index
    %134 = vector.load %arg5[%c1_111, %c0_112, %c0_113] : memref<2x8x256xf32, #tpu.memory_space<vmem>>, vector<1x8x256xf32>
    %135 = vector.shape_cast %134 : vector<1x8x256xf32> to vector<8x256xf32>
    %136 = vector.shape_cast %133 : vector<8x256xf32> to vector<1x8x256xf32>
    tpu.vector_store %arg5[%c1_111, %c0_112, %c0_113], %136 {strides = array<i32>} : memref<2x8x256xf32, #tpu.memory_space<vmem>>, vector<1x8x256xf32>,
    return
  }
  func.func @transform_0(%arg0: i32) -> (i32, i32, i32) {
    %c0_i32 = arith.constant 0 : i32
    %c0_i32_0 = arith.constant 0 : i32
    %c0_i32_1 = arith.constant 0 : i32
    return %arg0, %c0_i32, %c0_i32_0 : i32, i32, i32
  }
  func.func @transform_1(%arg0: i32) -> (i32, i32, i32) {
    %c0_i32 = arith.constant 0 : i32
    %c0_i32_0 = arith.constant 0 : i32
    %c0_i32_1 = arith.constant 0 : i32
    return %arg0, %c0_i32, %c0_i32_0 : i32, i32, i32
  }
  func.func @transform_2(%arg0: i32) -> (i32, i32) {
    %c0_i32 = arith.constant 0 : i32
    %c0_i32_0 = arith.constant 0 : i32
    %c0_i32_1 = arith.constant 0 : i32
    return %c0_i32, %c0_i32_0 : i32, i32
  }
  func.func @transform_3(%arg0: i32) -> (i32, i32) {
    %c0_i32 = arith.constant 0 : i32
    %c0_i32_0 = arith.constant 0 : i32
    %c0_i32_1 = arith.constant 0 : i32
    return %c0_i32, %c0_i32_0 : i32, i32
  }
  func.func @transform_4(%arg0: i32) -> (i32, i32, i32) {
    %c0_i32 = arith.constant 0 : i32
    %c0_i32_0 = arith.constant 0 : i32
    %c0_i32_1 = arith.constant 0 : i32
    return %arg0, %c0_i32, %c0_i32_0 : i32, i32, i32
  }
}

</mosaic_0001>

<bundles_post_ra>
// kernel: tpu_custom_call.1
= control target key start
LH: loop header
LB: loop body
LE: loop exit
PB: predicated region body
PF: predicated region fallthrough
CT: control target
= control target key end

     0   :  { %9 = vsyncpa [#allocation5], 0  ;;  %s1037_s0 = inlined_call_operand.hbm [shape: f32[2,4,256], index: 0, kind: input, shape index: {}]   ;;  %s1038_s1 = inlined_call_operand.hbm [shape: f32[2,4,256], index: 1, kind: input, shape index: {}]   ;;  %s1039_s2 = inlined_call_operand.vmem [shape: bf16[8,72], index: 2, kind: input, shape index: {}]   ;;  %s1040_s3 = inlined_call_operand.vmem [shape: f32[8,1], index: 3, kind: input, shape index: {}]   ;;  %s1041_s4 = inlined_call_operand.hbm [shape: f32[2,8,256], index: 4, kind: output, shape index: {}]  }
   0x1   :  { %10 = vsyncpa [#allocation8], 0 }
   0x2   :  { %11 = vsyncpa [#allocation6], 0  ;;  %s16_s17 = sshll.u32 %s1037_s0, 4  ;;  %s750_s18 = smov [#allocation4]   ;;  %s17_s17 = int_to_ptr.hbm [resolvable:$true] %s16_s17 }
   0x3   :  { %s18_s19 = sshll.u32 %s750_s18, 4  ;;  %s29_s22 = sshll.u32 %s1038_s1, 4  ;;  %s19_s19 = int_to_ptr.vmem [resolvable:$true] %s18_s19  ;;  %s30_s22 = int_to_ptr.hbm [resolvable:$true] %s29_s22 }
   0x4   :  { %s751_s23 = smov 128   ;;  %s752_s24 = smov 8  }
   0x5   :  { %24 = dma.hbm_to_vmem [thread:$0]  %s17_s17, 256, %s19_s19, [#allocation5], %s751_s23, %s751_s23, %s752_s24  }
   0x6   :  { %s753_s25 = smov [#allocation7]  }
   0x7   :  { %s31_s26 = sshll.u32 %s753_s25, 4  ;;  %s32_s26 = int_to_ptr.vmem [resolvable:$true] %s31_s26 }
   0x8   :  { %37 = dma.hbm_to_vmem [thread:$0]  %s30_s22, 256, %s32_s26, [#allocation8], %s751_s23, %s751_s23, %s752_s24  }
   0x9   :  { %744 = dma.done.wait [#allocation5], 256  }
   0xa   :  { %745 = vsyncadd [#allocation5], 4294967040 }
   0xb   :  { %746 = dma.done.wait [#allocation8], 256  }
   0xc   :  { %747 = vsyncadd [#allocation8], 4294967040  ;;  %v86_v0 = vld [vmem:[#allocation4] sm:$0xff]  ;;  %v95_v1 = vld [vmem:[#allocation7] sm:$0xff]  ;;  %vm84_vm0 = vcmask 138240   ;;  %v754_v4 = vmov 0.0   ;;  %v51_v57 = vlaneseq }
   0xd   :  { %88 = vst [vmem:[#allocation1] ss:$2 sm:$0xff] %v86_v0  ;;  %v109_v5 = vld [vmem:[#allocation4 + $0x8] sm:$0xff]  ;;  %vm82_vm1 = vcmask 1048440   ;;  %v119_v8 = vld [vmem:[#allocation7 + $0x8] sm:$0xff]  ;;  %s755_s0 = smov 112  }
   0xe   :  { %107 = vst.msk [vmem:[#allocation2 + $0x38] sm:$0xff] %vm84_vm0, %v754_v4  ;;  %s756_s1 = smov 16   ;;  %vm206_vm2 = vcmask 916480   ;;  %vm141_vm3 = vcmask 130048   ;;  %s757_s27 = smov 127   ;;  %v841_v58 = vand.u32 127, %v51_v57 }
   0xf   :  { %85 = vst.msk [vmem:[#allocation2 + $0x18] sm:$0xff] %vm84_vm0, %v754_v4  ;;  %s758_s28 = smov 1   ;;  %vm400_vm7 = vcmask 1043456   ;;  %vm759_vm11 = vmmov 1   ;;  %s480_s7 = sshll.u32 %s1041_s4, 4  ;;  %s481_s7 = int_to_ptr.hbm [resolvable:$true] %s480_s7 }
  0x10   :  { %106 = vst.msk [vmem:[#allocation2 + $0x20] sm:$0xff] %vm82_vm1, %v754_v4  ;;  %v53_v59 = vadd.s32 128, %v841_v58  ;;  %v58_v60 = vand.u32 15, %v841_v58  ;;  %vm150_vm4 = vcmp.lt.s32.totalorder %v841_v58, 1  ;;  %vm159_vm5 = vcmp.lt.s32.totalorder %v841_v58, 127  ;;  %s761_s8 = smov [#allocation9]  }
  0x11   :  { %83 = vst.msk [vmem:[#allocation2] sm:$0xff] %vm82_vm1, %v754_v4  ;;  %s478_s9 = sshll.u32 %s761_s8, 4  ;;  %s762_s10 = smov 256   ;;  %s479_s9 = int_to_ptr.vmem [resolvable:$true] %s478_s9 }
  0x12   :  { %v65_v61 = vand.u32 15, %v53_v59  ;;  %vm847_vm6 = vcmp.eq.s32.totalorder %v58_v60, 15  ;;  %vm855_vm9 = vcmp.ne.s32.totalorder %v58_v60, 0 }
  0x13   :  { %vm892_vm12 = vmpackc.low %vm759_vm11, %vm855_vm9 }
  0x14   :  { %v89_v2 = vld.sshfl [vmem:[#allocation1] sm:$0xff pattern:$0x75316420]  ;;  %v90_v3 = vld.sshfl [vmem:[#allocation1 + $0x8] sm:$0xff pattern:$0x75316420]  ;;  %vm502_vm14 = vmneg %vm847_vm6 }
  0x15   :  { %98 = vst [vmem:[#allocation1 + $0x1] ss:$2 sm:$0xff] %v95_v1  ;;  %v297_v24 = vld [vmem:[#allocation2 + $0x38] sm:$0xff]  ;;  %vm851_vm8 = vcmp.eq.s32.totalorder %v65_v61, 15  ;;  %vm859_vm10 = vcmp.ne.s32.totalorder %v65_v61, 0  ;;  %vm930_vm0 = vmpackc.low %vm502_vm14, %vm759_vm11 }
  0x16   :  { %93 = vst [vmem:[#allocation2 + $0x8] sm:$0xf] %v89_v2  ;;  %v196_v9 = vld [vmem:[#allocation2 + $0x18] sm:$0xff]  ;;  %vm902_vm13 = vmpackc.low %vm759_vm11, %vm859_vm10 }
  0x17   :  { %94 = vst [vmem:[#allocation2 + $0x10] sm:$0xf] %v90_v3  ;;  %v233_v16 = vld [vmem:[#allocation2 + $0x20] sm:$0xff]  ;;  %vm519_vm15 = vmneg %vm851_vm8 }
  0x18   :  { %v129_v17 = vld [vmem:[#allocation2] sm:$0xff]  ;;  %vm938_vm1 = vmpackc.low %vm519_vm15, %vm759_vm11 }
  0x1c   :  { %v99_v6 = vld.sshfl [vmem:[#allocation1] sm:$0xff pattern:$0x75316420]  ;;  %v100_v7 = vld.sshfl [vmem:[#allocation1 + $0x8] sm:$0xff pattern:$0x75316420] }
  0x1d   :  { %111 = vst [vmem:[#allocation1] ss:$2 sm:$0xff] %v109_v5 }
  0x1e   :  { %103 = vst [vmem:[#allocation2 + $0x8] sm:$0xf0] %v99_v6 }
  0x1f   :  { %104 = vst [vmem:[#allocation2 + $0x10] sm:$0xf0] %v100_v7 }
  0x24   :  { %v112_v10 = vld.sshfl [vmem:[#allocation1] sm:$0xff pattern:$0x75316420]  ;;  %v113_v11 = vld.sshfl [vmem:[#allocation1 + $0x8] sm:$0xff pattern:$0x75316420] }
  0x25   :  { %116 = vst [vmem:[#allocation2 + $0x28] sm:$0xf] %v112_v10  ;;  %v807_v23 = vld [vmem:[#allocation2 + $0x8] sm:$0xff] }
  0x26   :  { %117 = vst [vmem:[#allocation2 + $0x30] sm:$0xf] %v113_v11  ;;  %v794_v12 = vld [vmem:[#allocation2 + $0x10] sm:$0xff]  ;;  %v586_v25 = vpack.i.bf16 %v807_v23, %v297_v24 }
  0x27   :  { %122 = vst [vmem:[#allocation1 + $0x1] ss:$2 sm:$0xff] %v119_v8  ;;  %v591_v13 = vpack.i.bf16 %v196_v9, %v794_v12  ;;  %v606_v26 = vpack.i.bf16 %v794_v12, %v807_v23 }
  0x29   :  { %592 = vrot.lane.b32.xlu1 %v591_v13, %s755_s0 }
  0x2e   :  { %v123_v14 = vld.sshfl [vmem:[#allocation1] sm:$0xff pattern:$0x75316420]  ;;  %v124_v15 = vld.sshfl [vmem:[#allocation1 + $0x8] sm:$0xff pattern:$0x75316420] }
  0x2f   :  { %127 = vst [vmem:[#allocation2 + $0x28] sm:$0xf0] %v123_v14 }
  0x30   :  { %128 = vst [vmem:[#allocation2 + $0x30] sm:$0xf0] %v124_v15 }
  0x36   :  { %v797_v18 = vld [vmem:[#allocation2 + $0x28] sm:$0xff] }
  0x37   :  { %v799_v19 = vld [vmem:[#allocation2 + $0x30] sm:$0xff]  ;;  %v596_v20 = vpack.i.bf16 %v797_v18, %v233_v16 }
  0x38   :  { %v581_v21 = vpack.i.bf16 %v799_v19, %v797_v18  ;;  %v601_v22 = vpack.i.bf16 %v129_v17, %v799_v19 }
  0x39   :  { %597 = vrot.lane.b32.xlu1 %v596_v20, %s756_s1 }
  0x3a   :  { %582 = vrot.lane.b32.xlu0 %v581_v21, %s755_s0  ;;  %602 = vrot.lane.b32.xlu2 %v601_v22, %s756_s1 }
  0x42   :  { %587 = vrot.lane.b32.xlu0 %v586_v25, %s755_s0  ;;  %607 = vrot.lane.b32.xlu2 %v606_v26, %s756_s1 }
  0x94   :  { %v603_v34 = vpop.permute.xlu2 %602 }
  0x95   :  { %v604_v42 = vunpack.i.l.bf16 %v603_v34  ;;  %v605_v51 = vunpack.i.h.bf16 %v603_v34 }
  0x9b   :  { %v593_v27 = vpop.permute.xlu1 %592 }
  0x9c   :  { %v595_v29 = vunpack.i.h.bf16 %v593_v27  ;;  %v594_v30 = vunpack.i.l.bf16 %v593_v27  ;;  %v608_v50 = vpop.permute.xlu2 %607 }
  0x9d   :  { %v610_v52 = vunpack.i.h.bf16 %v608_v50  ;;  %v609_v53 = vunpack.i.l.bf16 %v608_v50 }
  0x9e   :  { %v813_v37 = vsel %vm206_vm2, %v594_v30, %v595_v29 }
  0x9f   :  { %v834_v54 = vsel %vm141_vm3, %v605_v51, %v609_v53  ;;  %v837_v55 = vsel %vm141_vm3, %v609_v53, %v610_v52 }
  0xa0   :  { %v641_v56 = vpack.i.bf16 %v837_v55, %v834_v54 }
  0xab   :  { %v598_v38 = vpop.permute.xlu1 %597 }
  0xac   :  { %v583_v28 = vpop.permute.xlu0 %582  ;;  %v600_v45 = vunpack.i.h.bf16 %v598_v38  ;;  %v599_v46 = vunpack.i.l.bf16 %v598_v38 }
  0xad   :  { %v585_v31 = vunpack.i.h.bf16 %v583_v28  ;;  %v584_v32 = vunpack.i.l.bf16 %v583_v28 }
  0xae   :  { %v826_v47 = vsel %vm141_vm3, %v599_v46, %v600_v45  ;;  %v829_v48 = vsel %vm141_vm3, %v600_v45, %v604_v42  ;;  %vm982_vm3 = vmpackc.low %vm859_vm10, %vm519_vm15 }
  0xaf   :  { %v815_v39 = vsel %vm206_vm2, %v584_v32, %v585_v31  ;;  %v651_v49 = vpack.i.bf16 %v829_v48, %v826_v47 }
  0xb4   :  { %v588_v33 = vpop.permute.xlu0 %587 }
  0xb5   :  { %v590_v35 = vunpack.i.h.bf16 %v588_v33  ;;  %v589_v36 = vunpack.i.l.bf16 %v588_v33 }
  0xb7   :  { %v817_v40 = vsel %vm206_vm2, %v585_v31, %v589_v36  ;;  %v819_v41 = vsel %vm206_vm2, %v590_v35, %v594_v30  ;;  %v760_v35 = vmov 0   ;;  %v390_v36 = vld [vmem:[%s1040_s3] sm:$0xff]  ;;  %vm969_vm2 = vmpackc.low %vm855_vm9, %vm502_vm14 }
  0xb8   :  { %v616_v43 = vpack.i.bf16 %v817_v40, %v815_v39  ;;  %v611_v44 = vpack.i.bf16 %v813_v37, %v819_v41  ;;  %671 = vset.pattern.permute.xlu0 %v760_v35 }
  0xba   :  { %617 = vrot.lane.b32.xlu0 %v616_v43, %s757_s27  ;;  %612 = vrot.lane.b32.xlu1 %v611_v44, %s757_s27 }
  0xbb   :  { %647 = vrot.lane.b32.xlu2 %v616_v43, %s758_s28 }
  0xc2   :  { %622 = vrot.lane.b32.xlu0 %v581_v21, %s757_s27  ;;  %627 = vrot.lane.b32.xlu1 %v611_v44, %s758_s28 }
  0xc3   :  { %652 = vrot.lane.b32.xlu2 %v651_v49, %s757_s27 }
  0xca   :  { %632 = vrot.lane.b32.xlu0 %v581_v21, %s758_s28  ;;  %637 = vrot.lane.b32.xlu1 %v606_v26, %s757_s27 }
  0xcb   :  { %657 = vrot.lane.b32.xlu2 %v651_v49, %s758_s28 }
  0xd2   :  { %662 = vrot.lane.b32.xlu1 %v606_v26, %s758_s28  ;;  %642 = vrot.lane.b32.xlu0 %v641_v56, %s757_s27 }
  0xd3   :  { %667 = vrot.lane.b32.xlu2 %v641_v56, %s758_s28 }
  0xda   :  { %393 = vperm.xlu0 %671, %v390_v36  }
 0x115   :  { %v648_v62 = vpop.permute.xlu2 %647 }
 0x116   :  { %v650_v8 = vunpack.i.h.bf16 %v648_v62  ;;  %v649_v9 = vunpack.i.l.bf16 %v648_v62 }
 0x118   :  { %v316_v28 = vsel %vm150_vm4, %v650_v8, %v649_v9  ;;  %v315_v29 = vsel %vm150_vm4, %v649_v9, %v650_v8 }
 0x119   :  { %v534_v50 = vpack.c.bf16 %v815_v39, %v316_v28  ;;  %v551_v51 = vpack.c.bf16 %v817_v40, %v315_v29 }
 0x11d   :  { %v863_v11 = vpop.permute.xlu2 %652 }
 0x125   :  { %v658_v60 = vpop.permute.xlu2 %657 }
 0x12c   :  { %v618_v63 = vpop.permute.xlu0 %617  ;;  %v613_v0 = vpop.permute.xlu1 %612 }
 0x12d   :  { %v620_v4 = vunpack.i.h.bf16 %v618_v63  ;;  %v619_v5 = vunpack.i.l.bf16 %v618_v63  ;;  %v615_v6 = vunpack.i.h.bf16 %v613_v0  ;;  %v614_v7 = vunpack.i.l.bf16 %v613_v0 }
 0x12e   :  { %v660_v0 = vunpack.i.h.bf16 %v658_v60 }
 0x12f   :  { %v323_v13 = vsel %vm159_vm5, %v619_v5, %v620_v4  ;;  %v324_v14 = vsel %vm159_vm5, %v620_v4, %v619_v5  ;;  %v223_v15 = vsel %vm159_vm5, %v614_v7, %v615_v6  ;;  %v224_v16 = vsel %vm159_vm5, %v615_v6, %v614_v7 }
 0x130   :  { %v325_v17 = vsel %vm847_vm6, 0.0, %v323_v13  ;;  %v326_v20 = vsel %vm851_vm8, 0.0, %v324_v14  ;;  %v225_v21 = vsel %vm847_vm6, 0.0, %v223_v15  ;;  %v226_v22 = vsel %vm851_vm8, 0.0, %v224_v16 }
 0x131   :  { %v388_v24 = vpack.c.bf16 %v325_v17, %v325_v17  ;;  %v389_v25 = vpack.c.bf16 %v326_v20, %v326_v20  ;;  %v386_v26 = vpack.c.bf16 %v225_v21, %v225_v21  ;;  %v387_v27 = vpack.c.bf16 %v226_v22, %v226_v22 }
 0x132   :  { %v659_v4 = vunpack.i.l.bf16 %v658_v60  ;;  %vm396_vm6 = vcmask 588800  }
 0x133   :  { %v408_v30 = vsel %vm400_vm7, %v388_v24, 0  ;;  %v411_v31 = vsel %vm400_vm7, %v389_v25, 0  ;;  %v402_v32 = vsel %vm400_vm7, %v386_v26, 0  ;;  %v405_v33 = vsel %vm400_vm7, %v387_v27, 0 }
 0x134   :  { %v623_v38 = vpop.permute.xlu0 %622  ;;  %442 = vmatpush.bf16.msra.mxu2 %v408_v30  ;;  %455 = vmatpush.bf16.msra.mxu3 %v411_v31  ;;  %v628_v42 = vpop.permute.xlu1 %627  ;;  %v254_v24 = vsel %vm150_vm4, %v660_v0, %v659_v4  ;;  %v253_v25 = vsel %vm150_vm4, %v659_v4, %v660_v0 }
 0x135   :  { %v625_v44 = vunpack.i.h.bf16 %v623_v38  ;;  %v624_v45 = vunpack.i.l.bf16 %v623_v38  ;;  %v630_v46 = vunpack.i.h.bf16 %v628_v42  ;;  %v629_v49 = vunpack.i.l.bf16 %v628_v42  ;;  %416 = vmatpush.bf16.msra.mxu0 %v402_v32  ;;  %429 = vmatpush.bf16.msra.mxu1 %v405_v33  ;;  %v333_v33 = vld [vmem:[%s1039_s2] sm:$0xf] }
 0x136   :  { %v547_v10 = vpack.c.bf16 %v826_v47, %v254_v24  ;;  %v564_v26 = vpack.c.bf16 %v829_v48, %v253_v25 }
 0x137   :  { %v216_v52 = vsel %vm150_vm4, %v630_v46, %v629_v49  ;;  %v215_v53 = vsel %vm150_vm4, %v629_v49, %v630_v46  ;;  %v285_v56 = vsel %vm159_vm5, %v624_v45, %v625_v44  ;;  %v286_v57 = vsel %vm159_vm5, %v625_v44, %v624_v45 }
 0x138   :  { %535 = vmatpush.bf16.msk.msra.mxu2 %vm892_vm12, %v534_v50  ;;  %552 = vmatpush.bf16.msk.msra.mxu3 %vm902_vm13, %v551_v51  ;;  %v500_v39 = vpack.c.bf16 %v819_v41, %v216_v52  ;;  %v517_v40 = vpack.c.bf16 %v813_v37, %v215_v53  ;;  %v655_v41 = vunpack.i.h.bf16 %v863_v11  ;;  %v654_v37 = vunpack.i.l.bf16 %v863_v11 }
 0x139   :  { %v538_v62 = vpack.c.bf16 %v285_v56, %v797_v18  ;;  %v555_v63 = vpack.c.bf16 %v286_v57, %v799_v19 }
 0x13a   :  { %501 = vmatpush.bf16.msk.msra.mxu0 %vm892_vm12, %v500_v39  ;;  %518 = vmatpush.bf16.msk.msra.mxu1 %vm902_vm13, %v517_v40  ;;  %v261_v13 = vsel %vm159_vm5, %v654_v37, %v655_v41  ;;  %v262_v18 = vsel %vm159_vm5, %v655_v41, %v654_v37 }
 0x13c   :  { %v633_v5 = vpop.permute.xlu0 %632  ;;  %v638_v6 = vpop.permute.xlu1 %637  ;;  %539 = vmatpush.bf16.msk.msra.mxu2 %vm930_vm0, %v538_v62  ;;  %556 = vmatpush.bf16.msk.msra.mxu3 %vm938_vm1, %v555_v63 }
 0x13d   :  { %v635_v7 = vunpack.i.h.bf16 %v633_v5  ;;  %v634_v8 = vunpack.i.l.bf16 %v633_v5  ;;  %v640_v9 = vunpack.i.h.bf16 %v638_v6  ;;  %v639_v11 = vunpack.i.l.bf16 %v638_v6 }
 0x13f   :  { %v184_v19 = vsel %vm159_vm5, %v639_v11, %v640_v9  ;;  %v185_v14 = vsel %vm159_vm5, %v640_v9, %v639_v11  ;;  %v278_v15 = vsel %vm150_vm4, %v635_v7, %v634_v8  ;;  %v277_v17 = vsel %vm150_vm4, %v634_v8, %v635_v7 }
 0x140   :  { %v504_v20 = vpack.c.bf16 %v184_v19, %v807_v23  ;;  %v521_v21 = vpack.c.bf16 %v185_v14, %v794_v12  ;;  %v543_v22 = vpack.c.bf16 %v278_v15, %v261_v13  ;;  %v560_v3 = vpack.c.bf16 %v277_v17, %v262_v18  ;;  %v668_v12 = vpop.permute.xlu2 %667 }
 0x141   :  { %v670_v31 = vunpack.i.h.bf16 %v668_v12  ;;  %v669_v32 = vunpack.i.l.bf16 %v668_v12 }
 0x142   :  { %505 = vmatpush.bf16.msk.msra.mxu0 %vm930_vm0, %v504_v20  ;;  %522 = vmatpush.bf16.msk.msra.mxu1 %vm938_vm1, %v521_v21 }
 0x143   :  { %544 = vmatpush.bf16.msk.msra.mxu2 %vm969_vm2, %v543_v22  ;;  %561 = vmatpush.bf16.msk.msra.mxu3 %vm982_vm3, %v560_v3  ;;  %v152_v44 = vsel %vm150_vm4, %v670_v31, %v669_v32  ;;  %v151_v45 = vsel %vm150_vm4, %v669_v32, %v670_v31 }
 0x144   :  { %v663_v23 = vpop.permute.xlu1 %662  ;;  %v643_v2 = vpop.permute.xlu0 %642  ;;  %v513_v46 = vpack.c.bf16 %v834_v54, %v152_v44  ;;  %v530_v49 = vpack.c.bf16 %v837_v55, %v151_v45 }
 0x145   :  { %v665_v27 = vunpack.i.h.bf16 %v663_v23  ;;  %v664_v28 = vunpack.i.l.bf16 %v663_v23  ;;  %v645_v29 = vunpack.i.h.bf16 %v643_v2  ;;  %v644_v30 = vunpack.i.l.bf16 %v643_v2 }
 0x147   :  { %548 = vmatpush.bf16.msk.msra.mxu2 %vm892_vm12, %v547_v10  ;;  %565 = vmatpush.bf16.msk.msra.mxu3 %vm902_vm13, %v564_v26  ;;  %v160_v47 = vsel %vm159_vm5, %v644_v30, %v645_v29  ;;  %v177_v48 = vsel %vm150_vm4, %v665_v27, %v664_v28  ;;  %v161_v35 = vsel %vm159_vm5, %v645_v29, %v644_v30 }
 0x148   :  { %v509_v36 = vpack.c.bf16 %v177_v48, %v160_v47  ;;  %v176_v38 = vsel %vm150_vm4, %v664_v28, %v665_v27 }
 0x149   :  { %v526_v42 = vpack.c.bf16 %v176_v38, %v161_v35 }
 0x14a   :  { %496 = vmatmul.msk.bf16.vlgmr.msra.gmra.mxu2 %vm396_vm6, %v333_v33  ;;  %497 = vmatmul.msk.bf16.vlgmr.msra.gmra.mxu3 %vm396_vm6, %v333_v33 }
 0x14b   :  { %510 = vmatpush.bf16.msk.msra.mxu0 %vm969_vm2, %v509_v36  ;;  %527 = vmatpush.bf16.msk.msra.mxu1 %vm982_vm3, %v526_v42 }
 0x14c   :  { %v394_v58 = vpop.permute.xlu0 %393 }
 0x14f   :  { %514 = vmatpush.bf16.msk.msra.mxu0 %vm892_vm12, %v513_v46  ;;  %531 = vmatpush.bf16.msk.msra.mxu1 %vm902_vm13, %v530_v49 }
 0x152   :  { %494 = vmatmul.msk.bf16.vlgmr.msra.gmra.mxu0 %vm396_vm6, %v333_v33  ;;  %495 = vmatmul.msk.bf16.vlgmr.msra.gmra.mxu1 %vm396_vm6, %v333_v33 }
 0x1cd   :  { %v448_v50 = vpop.f32.mrf.mxu2  ;;  %v461_v51 = vpop.f32.mrf.mxu3 }
 0x1ce   :  { %v449_v52 = vadd.f32 %v448_v50, %v394_v58  ;;  %v462_v53 = vadd.f32 %v461_v51, %v394_v58 }
 0x1cf   :  { %v422_v56 = vpop.f32.mrf.mxu0  ;;  %v435_v57 = vpop.f32.mrf.mxu1 }
 0x1d0   :  { %v467_v54 = vmax.f32 %v449_v52, 0.0  ;;  %v468_v55 = vmax.f32 %v462_v53, 0.0  ;;  %v423_v34 = vadd.f32 %v422_v56, %v394_v58  ;;  %v436_v43 = vadd.f32 %v435_v57, %v394_v58 }
 0x1d2   :  { %472 = vst [vmem:[#allocation9 + $0x10] sm:$0xff] %v467_v54  ;;  %v465_v39 = vmax.f32 %v423_v34, 0.0  ;;  %v466_v40 = vmax.f32 %v436_v43, 0.0 }
 0x1d3   :  { %473 = vst [vmem:[#allocation9 + $0x18] sm:$0xff] %v468_v55 }
 0x1d4   :  { %469 = vst [vmem:[#allocation9] sm:$0xff] %v465_v39 }
 0x1d5   :  { %470 = vst [vmem:[#allocation9 + $0x8] sm:$0xff] %v466_v40  ;;  %v450_v59 = vpop.f32.mrf.mxu2  ;;  %v463_v60 = vpop.f32.mrf.mxu3 }
 0x1d6   :  { %486 = dma.vmem_to_hbm [thread:$0]  %s479_s9, 512, %s481_s7, [#allocation6], %s762_s10, %s762_s10, %s756_s1  }
 0x1d7   :  { %v424_v61 = vpop.f32.mrf.mxu0  ;;  %v437_v41 = vpop.f32.mrf.mxu1 }
 0x1d8   :  { %748 = dma.done.wait [#allocation6], 512  }
 0x1d9   :  { %749 = vsyncadd [#allocation6], 4294966784 }
 0x1da   :  { %491 = vsyncpa [#allocation5], 1 }
 0x1db   :  { %492 = vsyncpa [#allocation8], 1 }
 0x1dc   :  { %493 = vsyncpa [#allocation6], 1 }

</bundles_post_ra>
